<compile_context>
chip_gen: v6e
topology: v6e:2x2x1
jax: 0.10.0
libtpu: 0.0.40
codegen_flags: <defaults>
</compile_context>

<pallas_src>
import jax
import jax.numpy as jnp
from jax.experimental import pallas as pl
from jax.experimental.pallas import tpu as pltpu

EPS = 1e-10
SCALAR = 20.0
NEG_BIG = -1e30  # finite stand-in for -inf so masked max never yields NaN


# ---------------------------------------------------------------------------
# Fused Pallas kernel: imp-scale -> L x (GINConv MLP) -> global pool.
# ---------------------------------------------------------------------------

def _make_fused_gin_kernel(num_layers, num_graphs, dim, pooling, use_imp):
    """Build the fused kernel (layer count / pooling resolved at trace time)."""

    def kernel(*refs):
        i = 0
        a_ref = refs[i]; i += 1          # [N, N]  bf16   adjacency (A[dst, src] = #edges)
        x_ref = refs[i]; i += 1          # [N, F]  f32    node features
        p_ref = refs[i]; i += 1          # [B, N]  f32    one-hot pooling matrix
        pt_ref = refs[i]; i += 1         # [N, B]  f32    its transpose (built in wrapper)
        if use_imp:
            imp_ref = refs[i]; i += 1    # [N, 1]  f32    node importance
        w_refs = refs[i:i + 4 * num_layers]; i += 4 * num_layers
        node_out_ref = refs[i]           # [N, L*dim] f32
        graph_out_ref = refs[i + 1]      # [B, L*dim] f32

        x = x_ref[...]
        pt = pt_ref[...]

        if use_imp:
            # scatter_max over batch + gather back, all in node-major layout
            # (no transpose, no MXU): VPU mul + XLU reduces only.
            imp = imp_ref[...]                                       # [N, 1]
            masked = jnp.where(pt > 0.0, imp, NEG_BIG)               # [N, B]
            seg_max = jnp.max(masked, axis=0, keepdims=True)         # [1, B]
            gathered = jnp.sum(pt * seg_max, axis=1, keepdims=True)  # [N, 1]
            imp_n = imp / (gathered + EPS)
            scale = (2.0 * imp_n - 1.0) / (2.0 * SCALAR) + 1.0
            x = x * scale

        a = a_ref[...]                                               # bf16, resident once
        h = x
        hs = []
        for l in range(num_layers):
            w1 = w_refs[4 * l][...]        # bf16 [in, dim]
            b1 = w_refs[4 * l + 1][...]    # f32  [1, dim]
            w2 = w_refs[4 * l + 2][...]    # bf16 [dim, dim]
            b2 = w_refs[4 * l + 3][...]    # f32  [1, dim]

            # GINConv (eps=0): h <- MLP( x + sum_{neighbors} x ) = MLP((I+A) x)
            agg = jnp.dot(a, h.astype(jnp.bfloat16),
                          preferred_element_type=jnp.float32)        # [N, in]
            pre = (h + agg).astype(jnp.bfloat16)
            z = jnp.dot(pre, w1, preferred_element_type=jnp.float32) + b1
            z = jnp.maximum(z, 0.0)                                   # inner ReLU of MLP
            z = jnp.dot(z.astype(jnp.bfloat16), w2,
                        preferred_element_type=jnp.float32) + b2
            h = jnp.maximum(z, 0.0)                                   # outer F.relu
            node_out_ref[:, l * dim:(l + 1) * dim] = h                # concat of xs
            hs.append(h)

        if pooling == "add":
            # Pool every layer at once: one lane-dense [B,N] @ [N, L*dim] matmul.
            graph_out_ref[...] = jnp.dot(p_ref[...], node_out_ref[...],
                                         preferred_element_type=jnp.float32)
        else:  # "max": per-graph masked max, no [B, N, F] broadcast.
            for l in range(num_layers):
                h_l = hs[l]
                for b in range(num_graphs):
                    mask = pt[:, b:b + 1] > 0.0                       # [N, 1]
                    row = jnp.max(jnp.where(mask, h_l, NEG_BIG),
                                  axis=0, keepdims=True)              # [1, dim]
                    graph_out_ref[b:b + 1, l * dim:(l + 1) * dim] = row

    return kernel


# ---------------------------------------------------------------------------
# Plain-JAX glue: parameter init, graph densification, readout assembly.
# ---------------------------------------------------------------------------

def init_gin_params(key, num_features, dim, num_gc_layers):
    params = []
    in_dim = num_features
    for _ in range(num_gc_layers):
        key, k1, k2, k3, k4 = jax.random.split(key, 5)
        lim1 = float(in_dim) ** -0.5
        w1 = jax.random.uniform(k1, (in_dim, dim), jnp.float32, -lim1, lim1)
        b1 = jax.random.uniform(k2, (1, dim), jnp.float32, -lim1, lim1)
        lim2 = float(dim) ** -0.5
        w2 = jax.random.uniform(k3, (dim, dim), jnp.float32, -lim2, lim2)
        b2 = jax.random.uniform(k4, (1, dim), jnp.float32, -lim2, lim2)
        params.append((w1, b1, w2, b2))
        in_dim = dim
    return params


def gin_forward(x, edge_index, batch, node_imp, params, num_graphs,
                pooling="add", readout="concat"):
    if pooling not in ("add", "max"):
        raise ValueError("Pooling Name <{}> is Unknown".format(pooling))
    if readout not in ("last", "concat", "add"):
        raise ValueError("Unknown readout {}".format(readout))

    N, F = x.shape
    L = len(params)
    dim = params[0][2].shape[1]

    x = x.astype(jnp.float32)

    # Dense adjacency (messages src -> dst, summed at dst).  Edge counts are
    # small integers -> exact in bf16; halves A's VMEM footprint.
    src, dst = edge_index[0], edge_index[1]
    a = jnp.zeros((N, N), jnp.float32).at[dst, src].add(1.0).astype(jnp.bfloat16)

    # One-hot pooling matrix and its transpose (layout plumbing done once here).
    onehot = (batch[None, :] == jnp.arange(num_graphs, dtype=batch.dtype)[:, None])
    p = onehot.astype(jnp.float32)                    # [B, N]
    pt = jnp.transpose(onehot).astype(jnp.float32)    # [N, B]

    use_imp = node_imp is not None
    inputs = [a, x, p, pt]
    if use_imp:
        inputs.append(node_imp.reshape(-1, 1).astype(jnp.float32))
    for (w1, b1, w2, b2) in params:
        inputs += [w1.astype(jnp.bfloat16), b1.astype(jnp.float32),
                   w2.astype(jnp.bfloat16), b2.astype(jnp.float32)]

    # Cost estimate + VMEM budget sized to the actual resident set.
    flops = 2 * num_graphs * N * L * dim
    in_w = F
    for _ in range(L):
        flops += 2 * N * N * in_w + 2 * N * in_w * dim + 2 * N * dim * dim
        in_w = dim
    out_bytes = (N * L * dim + num_graphs * L * dim) * 4
    in_bytes = sum(int(v.size) * int(v.dtype.itemsize) for v in inputs)
    resident = in_bytes + out_bytes
    vmem_limit = int(min(96 * 2 ** 20, max(32 * 2 ** 20, 3 * resident)))

    kernel = _make_fused_gin_kernel(L, num_graphs, dim, pooling, use_imp)

    node_emb, pooled = pl.pallas_call(
        kernel,
        out_shape=(jax.ShapeDtypeStruct((N, L * dim), jnp.float32),
                   jax.ShapeDtypeStruct((num_graphs, L * dim), jnp.float32)),
        in_specs=[pl.BlockSpec(memory_space=pltpu.MemorySpace.VMEM)
                  for _ in inputs],
        out_specs=(pl.BlockSpec(memory_space=pltpu.MemorySpace.VMEM),
                   pl.BlockSpec(memory_space=pltpu.MemorySpace.VMEM)),
        compiler_params=pltpu.CompilerParams(vmem_limit_bytes=vmem_limit),
        cost_estimate=pl.CostEstimate(flops=int(flops), transcendentals=0,
                                      bytes_accessed=int(resident)),
    )(*inputs)

    # `pooled` is the per-layer add/max pools concatenated along features
    # ([B, L*dim]); the three readout modes are cheap views / sums of it.
    if readout == "concat":
        graph_emb = pooled
    elif readout == "last":
        graph_emb = pooled[:, (L - 1) * dim:]
    else:  # "add"
        graph_emb = jnp.sum(pooled.reshape(num_graphs, L, dim), axis=1)

    return graph_emb, node_emb


# ---------------------------------------------------------------------------
# Demo
# ---------------------------------------------------------------------------

if __name__ == "__main__":
    key = jax.random.PRNGKey(0)
    num_features, dim, num_gc_layers = 8, 16, 2
    num_nodes, num_graphs, num_edges = 24, 4, 64

    k_x, k_src, k_dst, k_imp, k_par = jax.random.split(key, 5)

    x = jax.random.normal(k_x, (num_nodes, num_features), jnp.float32)
    src = jax.random.randint(k_src, (num_edges,), 0, num_nodes, dtype=jnp.int32)
    dst = jax.random.randint(k_dst, (num_edges,), 0, num_nodes, dtype=jnp.int32)
    edge_index = jnp.stack([src, dst], axis=0)
    batch = jnp.repeat(jnp.arange(num_graphs, dtype=jnp.int32),
                       num_nodes // num_graphs)
    node_imp = jax.random.uniform(k_imp, (num_nodes, 1), jnp.float32)

    params = init_gin_params(k_par, num_features, dim, num_gc_layers)

    # Config 1: the module's documented config (add pooling, concat readout,
    # node_imp provided).
    graph_emb, node_emb = gin_forward(x, edge_index, batch, node_imp, params,
                                      num_graphs, pooling="add",
                                      readout="concat")
    # Config 2: exercise the max-pool / last-readout / no-importance branches.
    graph_emb2, node_emb2 = gin_forward(x, edge_index, batch, None, params,
                                        num_graphs, pooling="max",
                                        readout="last")
    jax.block_until_ready((graph_emb, node_emb, graph_emb2, node_emb2))

    assert graph_emb.shape == (num_graphs, dim * num_gc_layers)
    assert node_emb.shape == (num_nodes, dim * num_gc_layers)
    assert graph_emb2.shape == (num_graphs, dim)
    assert node_emb2.shape == (num_nodes, dim * num_gc_layers)
    assert bool(jnp.all(jnp.isfinite(graph_emb)))
    assert bool(jnp.all(jnp.isfinite(node_emb)))
    assert bool(jnp.all(jnp.isfinite(graph_emb2)))
    assert bool(jnp.all(jnp.isfinite(node_emb2)))

    print("KERNEL_OK")
</pallas_src>

<mosaic_0001>
module attributes {stable_mosaic.version = 11 : i64} {
  func.func @kernel(%arg0: memref<24x24xbf16, #tpu.memory_space<vmem>>, %arg1: memref<24x8xf32, #tpu.memory_space<vmem>>, %arg2: memref<4x24xf32, #tpu.memory_space<vmem>>, %arg3: memref<24x4xf32, #tpu.memory_space<vmem>>, %arg4: memref<24x1xf32, #tpu.memory_space<vmem>>, %arg5: memref<8x16xbf16, #tpu.memory_space<vmem>>, %arg6: memref<1x16xf32, #tpu.memory_space<vmem>>, %arg7: memref<16x16xbf16, #tpu.memory_space<vmem>>, %arg8: memref<1x16xf32, #tpu.memory_space<vmem>>, %arg9: memref<16x16xbf16, #tpu.memory_space<vmem>>, %arg10: memref<1x16xf32, #tpu.memory_space<vmem>>, %arg11: memref<16x16xbf16, #tpu.memory_space<vmem>>, %arg12: memref<1x16xf32, #tpu.memory_space<vmem>>, %arg13: memref<24x32xf32, #tpu.memory_space<vmem>>, %arg14: memref<4x32xf32, #tpu.memory_space<vmem>>) attributes {dimension_semantics = [], scalar_prefetch = 0 : i64, scratch_operands = 0 : i64, tpu.core_type = #tpu.core_type<tc>} {
    %c0 = arith.constant 0 : index
    %c0_0 = arith.constant 0 : index
    %0 = vector.load %arg1[%c0, %c0_0] : memref<24x8xf32, #tpu.memory_space<vmem>>, vector<24x8xf32>
    %c0_1 = arith.constant 0 : index
    %c0_2 = arith.constant 0 : index
    %1 = vector.load %arg3[%c0_1, %c0_2] : memref<24x4xf32, #tpu.memory_space<vmem>>, vector<24x4xf32>
    %c0_3 = arith.constant 0 : index
    %c0_4 = arith.constant 0 : index
    %2 = vector.load %arg4[%c0_3, %c0_4] : memref<24x1xf32, #tpu.memory_space<vmem>>, vector<24x1xf32>
    %cst = arith.constant 0.000000e+00 : f32
    %3 = vector.broadcast %cst : f32 to vector<24x4xf32>
    %4 = arith.cmpf ogt, %1, %3 : vector<24x4xf32>
    %cst_5 = arith.constant -1.000000e+30 : f32
    %5 = vector.shape_cast %2 : vector<24x1xf32> to vector<24x1xf32>
    %6 = vector.broadcast %5 : vector<24x1xf32> to vector<24x4xf32>
    %7 = vector.broadcast %cst_5 : f32 to vector<24x4xf32>
    %8 = arith.select %4, %6, %7 : vector<24x4xi1>, vector<24x4xf32>
    %cst_6 = arith.constant dense<0xFF800000> : vector<4xf32>
    %9 = vector.multi_reduction <maximumf>, %8, %cst_6 [0] : vector<24x4xf32> to vector<4xf32>
    %10 = vector.shape_cast %9 : vector<4xf32> to vector<1x4xf32>
    %11 = vector.broadcast %10 : vector<1x4xf32> to vector<24x4xf32>
    %12 = arith.mulf %1, %11 : vector<24x4xf32>
    %cst_7 = arith.constant dense<0.000000e+00> : vector<24xf32>
    %13 = vector.multi_reduction <add>, %12, %cst_7 [1] : vector<24x4xf32> to vector<24xf32>
    %14 = vector.shape_cast %13 : vector<24xf32> to vector<24x1xf32>
    %cst_8 = arith.constant 1.000000e-10 : f32
    %15 = vector.broadcast %cst_8 : f32 to vector<24x1xf32>
    %16 = arith.addf %14, %15 : vector<24x1xf32>
    %17 = arith.divf %2, %16 : vector<24x1xf32>
    %cst_9 = arith.constant 2.000000e+00 : f32
    %18 = vector.broadcast %cst_9 : f32 to vector<24x1xf32>
    %19 = arith.mulf %18, %17 : vector<24x1xf32>
    %cst_10 = arith.constant 1.000000e+00 : f32
    %20 = vector.broadcast %cst_10 : f32 to vector<24x1xf32>
    %21 = arith.subf %19, %20 : vector<24x1xf32>
    %cst_11 = arith.constant 4.000000e+01 : f32
    %22 = vector.broadcast %cst_11 : f32 to vector<24x1xf32>
    %23 = arith.divf %21, %22 : vector<24x1xf32>
    %cst_12 = arith.constant 1.000000e+00 : f32
    %24 = vector.broadcast %cst_12 : f32 to vector<24x1xf32>
    %25 = arith.addf %23, %24 : vector<24x1xf32>
    %26 = vector.broadcast %25 : vector<24x1xf32> to vector<24x8xf32>
    %27 = arith.mulf %0, %26 : vector<24x8xf32>
    %c0_13 = arith.constant 0 : index
    %c0_14 = arith.constant 0 : index
    %28 = vector.load %arg0[%c0_13, %c0_14] : memref<24x24xbf16, #tpu.memory_space<vmem>>, vector<24x24xbf16>
    %c0_15 = arith.constant 0 : index
    %c0_16 = arith.constant 0 : index
    %29 = vector.load %arg5[%c0_15, %c0_16] : memref<8x16xbf16, #tpu.memory_space<vmem>>, vector<8x16xbf16>
    %c0_17 = arith.constant 0 : index
    %c0_18 = arith.constant 0 : index
    %30 = vector.load %arg6[%c0_17, %c0_18] : memref<1x16xf32, #tpu.memory_space<vmem>>, vector<1x16xf32>
    %c0_19 = arith.constant 0 : index
    %c0_20 = arith.constant 0 : index
    %31 = vector.load %arg7[%c0_19, %c0_20] : memref<16x16xbf16, #tpu.memory_space<vmem>>, vector<16x16xbf16>
    %c0_21 = arith.constant 0 : index
    %c0_22 = arith.constant 0 : index
    %32 = vector.load %arg8[%c0_21, %c0_22] : memref<1x16xf32, #tpu.memory_space<vmem>>, vector<1x16xf32>
    %33 = arith.truncf %27 : vector<24x8xf32> to vector<24x8xbf16>
    %cst_23 = arith.constant dense<0.000000e+00> : vector<24x8xf32>
    %34 = tpu.matmul %28, %33, %cst_23 {dimension_numbers = #tpu.dot_dimension_numbers<[1], [0], [0], [1], [0, 0, 1, 1], [], []>} : vector<24x24xbf16>, vector<24x8xbf16>, vector<24x8xf32> -> vector<24x8xf32>
    %35 = arith.addf %27, %34 : vector<24x8xf32>
    %36 = arith.truncf %35 : vector<24x8xf32> to vector<24x8xbf16>
    %cst_24 = arith.constant dense<0.000000e+00> : vector<24x16xf32>
    %37 = tpu.matmul %36, %29, %cst_24 {dimension_numbers = #tpu.dot_dimension_numbers<[1], [0], [0], [1], [0, 0, 1, 1], [], []>} : vector<24x8xbf16>, vector<8x16xbf16>, vector<24x16xf32> -> vector<24x16xf32>
    %38 = vector.broadcast %30 : vector<1x16xf32> to vector<24x16xf32>
    %39 = arith.addf %37, %38 : vector<24x16xf32>
    %cst_25 = arith.constant 0.000000e+00 : f32
    %40 = vector.broadcast %cst_25 : f32 to vector<24x16xf32>
    %41 = arith.maximumf %39, %40 : vector<24x16xf32>
    %42 = arith.truncf %41 : vector<24x16xf32> to vector<24x16xbf16>
    %cst_26 = arith.constant dense<0.000000e+00> : vector<24x16xf32>
    %43 = tpu.matmul %42, %31, %cst_26 {dimension_numbers = #tpu.dot_dimension_numbers<[1], [0], [0], [1], [0, 0, 1, 1], [], []>} : vector<24x16xbf16>, vector<16x16xbf16>, vector<24x16xf32> -> vector<24x16xf32>
    %44 = vector.broadcast %32 : vector<1x16xf32> to vector<24x16xf32>
    %45 = arith.addf %43, %44 : vector<24x16xf32>
    %cst_27 = arith.constant 0.000000e+00 : f32
    %46 = vector.broadcast %cst_27 : f32 to vector<24x16xf32>
    %47 = arith.maximumf %45, %46 : vector<24x16xf32>
    %c0_28 = arith.constant 0 : index
    %c0_29 = arith.constant 0 : index
    %48 = vector.load %arg13[%c0_28, %c0_29] : memref<24x32xf32, #tpu.memory_space<vmem>>, vector<24x16xf32>
    tpu.vector_store %arg13[%c0_28, %c0_29], %47 {strides = array<i32>} : memref<24x32xf32, #tpu.memory_space<vmem>>, vector<24x16xf32>,
    %c0_30 = arith.constant 0 : index
    %c0_31 = arith.constant 0 : index
    %49 = vector.load %arg9[%c0_30, %c0_31] : memref<16x16xbf16, #tpu.memory_space<vmem>>, vector<16x16xbf16>
    %c0_32 = arith.constant 0 : index
    %c0_33 = arith.constant 0 : index
    %50 = vector.load %arg10[%c0_32, %c0_33] : memref<1x16xf32, #tpu.memory_space<vmem>>, vector<1x16xf32>
    %c0_34 = arith.constant 0 : index
    %c0_35 = arith.constant 0 : index
    %51 = vector.load %arg11[%c0_34, %c0_35] : memref<16x16xbf16, #tpu.memory_space<vmem>>, vector<16x16xbf16>
    %c0_36 = arith.constant 0 : index
    %c0_37 = arith.constant 0 : index
    %52 = vector.load %arg12[%c0_36, %c0_37] : memref<1x16xf32, #tpu.memory_space<vmem>>, vector<1x16xf32>
    %53 = arith.truncf %47 : vector<24x16xf32> to vector<24x16xbf16>
    %cst_38 = arith.constant dense<0.000000e+00> : vector<24x16xf32>
    %54 = tpu.matmul %28, %53, %cst_38 {dimension_numbers = #tpu.dot_dimension_numbers<[1], [0], [0], [1], [0, 0, 1, 1], [], []>} : vector<24x24xbf16>, vector<24x16xbf16>, vector<24x16xf32> -> vector<24x16xf32>
    %55 = arith.addf %47, %54 : vector<24x16xf32>
    %56 = arith.truncf %55 : vector<24x16xf32> to vector<24x16xbf16>
    %cst_39 = arith.constant dense<0.000000e+00> : vector<24x16xf32>
    %57 = tpu.matmul %56, %49, %cst_39 {dimension_numbers = #tpu.dot_dimension_numbers<[1], [0], [0], [1], [0, 0, 1, 1], [], []>} : vector<24x16xbf16>, vector<16x16xbf16>, vector<24x16xf32> -> vector<24x16xf32>
    %58 = vector.broadcast %50 : vector<1x16xf32> to vector<24x16xf32>
    %59 = arith.addf %57, %58 : vector<24x16xf32>
    %cst_40 = arith.constant 0.000000e+00 : f32
    %60 = vector.broadcast %cst_40 : f32 to vector<24x16xf32>
    %61 = arith.maximumf %59, %60 : vector<24x16xf32>
    %62 = arith.truncf %61 : vector<24x16xf32> to vector<24x16xbf16>
    %cst_41 = arith.constant dense<0.000000e+00> : vector<24x16xf32>
    %63 = tpu.matmul %62, %51, %cst_41 {dimension_numbers = #tpu.dot_dimension_numbers<[1], [0], [0], [1], [0, 0, 1, 1], [], []>} : vector<24x16xbf16>, vector<16x16xbf16>, vector<24x16xf32> -> vector<24x16xf32>
    %64 = vector.broadcast %52 : vector<1x16xf32> to vector<24x16xf32>
    %65 = arith.addf %63, %64 : vector<24x16xf32>
    %cst_42 = arith.constant 0.000000e+00 : f32
    %66 = vector.broadcast %cst_42 : f32 to vector<24x16xf32>
    %67 = arith.maximumf %65, %66 : vector<24x16xf32>
    %c0_43 = arith.constant 0 : index
    %c16 = arith.constant 16 : index
    %68 = vector.load %arg13[%c0_43, %c16] : memref<24x32xf32, #tpu.memory_space<vmem>>, vector<24x16xf32>
    tpu.vector_store %arg13[%c0_43, %c16], %67 {strides = array<i32>} : memref<24x32xf32, #tpu.memory_space<vmem>>, vector<24x16xf32>,
    %c0_44 = arith.constant 0 : index
    %c0_45 = arith.constant 0 : index
    %69 = vector.load %arg2[%c0_44, %c0_45] : memref<4x24xf32, #tpu.memory_space<vmem>>, vector<4x24xf32>
    %c0_46 = arith.constant 0 : index
    %c0_47 = arith.constant 0 : index
    %70 = vector.load %arg13[%c0_46, %c0_47] : memref<24x32xf32, #tpu.memory_space<vmem>>, vector<24x32xf32>
    %cst_48 = arith.constant dense<0.000000e+00> : vector<4x32xf32>
    %71 = tpu.matmul %69, %70, %cst_48 {dimension_numbers = #tpu.dot_dimension_numbers<[1], [0], [0], [1], [0, 0, 1, 1], [], []>} : vector<4x24xf32>, vector<24x32xf32>, vector<4x32xf32> -> vector<4x32xf32>
    %c0_49 = arith.constant 0 : index
    %c0_50 = arith.constant 0 : index
    %72 = vector.load %arg14[%c0_49, %c0_50] : memref<4x32xf32, #tpu.memory_space<vmem>>, vector<4x32xf32>
    tpu.vector_store %arg14[%c0_49, %c0_50], %71 {strides = array<i32>} : memref<4x32xf32, #tpu.memory_space<vmem>>, vector<4x32xf32>,
    return
  }
}

</mosaic_0001>

<bundles_post_ra>
// kernel: tpu_custom_call.1
= control target key start
LH: loop header
LB: loop body
LE: loop exit
PB: predicated region body
PF: predicated region fallthrough
CT: control target
= control target key end

     0   :  { %20 = vsyncpa [#allocation3], 0  ;;  %v862_v2 = vmov 0   ;;  %s1037_s0 = inlined_call_operand.vmem [shape: bf16[24,24], index: 0, kind: input, shape index: {}]   ;;  %s1038_s1 = inlined_call_operand.vmem [shape: f32[24,8], index: 1, kind: input, shape index: {}]   ;;  %s1039_s2 = inlined_call_operand.vmem [shape: f32[4,24], index: 2, kind: input, shape index: {}]   ;;  %s1040_s3 = inlined_call_operand.vmem [shape: f32[24,4], index: 3, kind: input, shape index: {}]   ;;  %s1041_s4 = inlined_call_operand.vmem [shape: f32[24,1], index: 4, kind: input, shape index: {}]   ;;  %s1042_s5 = inlined_call_operand.vmem [shape: bf16[8,16], index: 5, kind: input, shape index: {}]   ;;  %s1043_s6 = inlined_call_operand.vmem [shape: f32[1,16], index: 6, kind: input, shape index: {}]   ;;  %s1044_s7 = inlined_call_operand.vmem [shape: bf16[16,16], index: 7, kind: input, shape index: {}]   ;;  %s1045_s8 = inlined_call_operand.vmem [shape: f32[1,16], index: 8, kind: input, shape index: {}]   ;;  %s1046_s9 = inlined_call_operand.vmem [shape: bf16[16,16], index: 9, kind: input, shape index: {}]   ;;  %s1047_s10 = inlined_call_operand.vmem [shape: f32[1,16], index: 10, kind: input, shape index: {}]   ;;  %s1048_s11 = inlined_call_operand.vmem [shape: bf16[16,16], index: 11, kind: input, shape index: {}]   ;;  %s1049_s12 = inlined_call_operand.vmem [shape: f32[1,16], index: 12, kind: input, shape index: {}]   ;;  %s1050_s13 = inlined_call_operand.hbm [shape: f32[24,32], index: 13, kind: output, shape index: {0}]   ;;  %s1051_s14 = inlined_call_operand.hbm [shape: f32[4,32], index: 14, kind: output, shape index: {1}]  }
   0x1   :  { %v55_v0 = vld [vmem:[%s1041_s4] sm:$0xff]  ;;  %v57_v1 = vld [vmem:[%s1041_s4 + $0x10] sm:$0xff]  ;;  %805 = vset.pattern.permute.xlu0 %v862_v2  ;;  %806 = vset.pattern.permute.xlu1 %v862_v2  ;;  %v56_v3 = vld [vmem:[%s1041_s4 + $0x8] sm:$0xff] }
   0x2   :  { %63 = vperm.xlu0 %805, %v55_v0   ;;  %73 = vperm.xlu1 %806, %v57_v1  }
   0x3   :  { %21 = vsyncpa [#allocation5], 0  ;;  %v52_v4 = vld [vmem:[%s1040_s3] sm:$0xff]  ;;  %v54_v5 = vld [vmem:[%s1040_s3 + $0x10] sm:$0xff]  ;;  %vm79_vm3 = vcmask 31744   ;;  %vm161_vm4 = vcmask 195584  }
   0x4   :  { %v53_v6 = vld [vmem:[%s1040_s3 + $0x8] sm:$0xff]  ;;  %vm58_vm0 = vcmp.gt.f32.partialorder %v52_v4, 0.0  ;;  %vm60_vm1 = vcmp.gt.f32.partialorder %v54_v5, 0.0  ;;  %v807_v54 = vld [vmem:[%s1037_s0] sm:$0xff]   ;;  %v51_v55 = vld [vmem:[%s1038_s1 + $0x10] sm:$0xff]  ;;  %vm168_vm5 = vcmask 1043456  }
   0x5   :  { %vm59_vm2 = vcmp.gt.f32.partialorder %v53_v6, 0.0  ;;  %749 = vmatprep.mubr.msk.bf16.mxu0 %vm161_vm4, %v807_v54  ;;  %v49_v59 = vld [vmem:[%s1038_s1] sm:$0xff]  ;;  %v50_v60 = vld [vmem:[%s1038_s1 + $0x8] sm:$0xff]  ;;  %vm231_vm6 = vcmask 64512   ;;  %vm306_vm7 = vcmask 130048   ;;  %vm865_vm8 = vmmov 0  }
   0x6   :  { %68 = vperm.xlu0 %805, %v56_v3   ;;  %vm583_vm9 = vcmask 261248   ;;  %s866_s4 = smov [#allocation2]  }
   0x7   :  { %s671_s25 = sshll.u32 %s866_s4, 4  ;;  %s672_s25 = int_to_ptr.vmem [resolvable:$true] %s671_s25 }
   0x8   :  { %s818_s26 = scalar_lea.vmem %s672_s25, 384  ;;  %p823_p1 = scmp.lt.s32.totalorder %s672_s25, %s672_s25 }
   0x9   :  { %p819_p0 = scmp.ne.s32.totalorder %s672_s25, %s818_s26  ;;  %p824_p2 = scmp.lt.s32.totalorder %s818_s26, %s818_s26 }
   0xb   :  { %p825_p3 = por %p824_p2, %p823_p1 }
   0xd   :  { %p826_p4 = pnand %p825_p3, %p819_p0 }
  0x7d   :  { %v64_v7 = vpop.permute.xlu0 %63  ;;  %v74_v8 = vpop.permute.xlu1 %73 }
  0x7e   :  { %v76_v9 = vsel %vm58_vm0, %v64_v7, -1e+30  ;;  %v78_v10 = vsel %vm60_vm1, %v74_v8, -1e+30 }
  0x7f   :  { %v80_v13 = vsel %vm79_vm3, %v76_v9, -inf  ;;  %v82_v15 = vsel %vm79_vm3, %v78_v10, -inf }
  0x81   :  { %v69_v11 = vpop.permute.xlu0 %68 }
  0x82   :  { %v77_v12 = vsel %vm59_vm2, %v69_v11, -1e+30 }
  0x83   :  { %v81_v14 = vsel %vm79_vm3, %v77_v12, -inf }
  0x84   :  { %v83_v16 = vmax.f32 %v80_v13, %v81_v14 }
  0x86   :  { %v84_v17 = vmax.f32 %v83_v16, %v82_v15  ;;  %v809_v15 = vld [vmem:[%s1044_s7] sm:$0xff]  }
  0x88   :  { %v85_v18 = vrot.slane %v84_v17, 4 }
  0x8a   :  { %v86_v19 = vmax.f32 %v84_v17, %v85_v18  ;;  %v703_v17 = vld [vmem:[%s1043_s6] ss:$0 sm:$0xff] }
  0x8c   :  { %v87_v20 = vrot.slane %v86_v19, 2 }
  0x8e   :  { %v88_v21 = vmax.f32 %v86_v19, %v87_v20 }
  0x90   :  { %v89_v22 = vrot.slane %v88_v21, 1 }
  0x92   :  { %v90_v23 = vmax.f32 %v88_v21, %v89_v22 }
  0x94   :  { %v93_v24 = vmul.f32 %v90_v23, %v54_v5  ;;  %v91_v25 = vmul.f32 %v90_v23, %v52_v4  ;;  %v92_v28 = vmul.f32 %v90_v23, %v53_v6  ;;  %v146_v4 = vld [vmem:[%s1042_s5] sm:$0xf] }
  0x95   :  { %795 = vmatprep.subr.msk.bf16.mxu1 %vm168_vm5, %v146_v4  ;;  %v239_v5 = vsel %vm168_vm5, %v146_v4, 0  ;;  %v863_v4 = vmov 0.0  }
  0x96   :  { %v100_v26 = vsel %vm79_vm3, %v93_v24, 0.0  ;;  %v94_v27 = vsel %vm79_vm3, %v91_v25, 0.0  ;;  %v97_v29 = vsel %vm79_vm3, %v92_v28, 0.0  ;;  %754 = vmatpush3.bf16.msra.mxu1 %v239_v5 }
  0x97   :  { %101 = vadd.xlane.f32.xlu1 %v100_v26  ;;  %95 = vadd.xlane.f32.xlu0 %v94_v27 }
  0x98   :  { %759 = vmatprep.subr.bf16.mxu1 %v809_v15 }
  0x9b   :  { %98 = vadd.xlane.f32.xlu0 %v97_v29  ;;  %v706_v29 = vld [vmem:[%s1045_s8] ss:$0 sm:$0xff] }
 0x120   :  { %v102_v30 = vpop.xlane.xlu1 %101  ;;  %v96_v31 = vpop.xlane.xlu0 %95 }
 0x121   :  { %v105_v32 = vadd.f32 1e-10, %v102_v30  ;;  %v103_v33 = vadd.f32 1e-10, %v96_v31 }
 0x123   :  { %812 = vrcp.f32 %v105_v32 }
 0x124   :  { %814 = vrcp.f32 %v103_v33  ;;  %v99_v34 = vpop.xlane.xlu0 %98 }
 0x125   :  { %v104_v35 = vadd.f32 1e-10, %v99_v34 }
 0x127   :  { %816 = vrcp.f32 %v104_v35 }
 0x130   :  { %v813_v36 = vpop.eup %812 }
 0x131   :  { %v815_v37 = vpop.eup %814  ;;  %v111_v38 = vmul.f32 %v813_v36, %v57_v1 }
 0x132   :  { %v107_v39 = vmul.f32 %v815_v37, %v55_v0 }
 0x133   :  { %v114_v40 = vmul.f32 2.0, %v111_v38 }
 0x134   :  { %v817_v41 = vpop.eup %816  ;;  %v112_v42 = vmul.f32 2.0, %v107_v39 }
 0x135   :  { %v698_v43 = vadd.f32 -1.0, %v114_v40  ;;  %v109_v44 = vmul.f32 %v817_v41, %v56_v3  ;;  %v808_v3 = vld [vmem:[%s1037_s0 + $0x8] ss:$0 sps:$4 sm:$0xff]  }
 0x136   :  { %v696_v45 = vadd.f32 -1.0, %v112_v42 }
 0x137   :  { %v121_v46 = vmul.f32 0.025, %v698_v43  ;;  %v113_v47 = vmul.f32 2.0, %v109_v44  ;;  %v810_v43 = vld [vmem:[%s1046_s9] sm:$0xff]  }
 0x138   :  { %v119_v48 = vmul.f32 0.025, %v696_v45 }
 0x139   :  { %v124_v49 = vadd.f32 1.0, %v121_v46  ;;  %v697_v50 = vadd.f32 -1.0, %v113_v47 }
 0x13a   :  { %v122_v51 = vadd.f32 1.0, %v119_v48 }
 0x13b   :  { %137 = vperm.xlu1 %806, %v124_v49   ;;  %v120_v52 = vmul.f32 0.025, %v697_v50 }
 0x13c   :  { %127 = vperm.xlu0 %805, %v122_v51  }
 0x13d   :  { %v123_v53 = vadd.f32 1.0, %v120_v52 }
 0x13f   :  { %132 = vperm.xlu1 %806, %v123_v53   ;;  %v811_v53 = vld [vmem:[%s1048_s11] sm:$0xff]  }
 0x1b6   :  { %v138_v56 = vpop.permute.xlu1 %137 }
 0x1b7   :  { %v142_v57 = vmul.f32 %v138_v56, %v51_v55  ;;  %v128_v58 = vpop.permute.xlu0 %127  ;;  %v712_v55 = vld [vmem:[%s1047_s10] ss:$0 sm:$0xff]  ;;  %s864_s10 = smov 16  }
 0x1b8   :  { %v140_v63 = vmul.f32 %v128_v58, %v49_v59 }
 0x1b9   :  { %v152_v61 = vpack.c.bf16 %v142_v57, %v142_v57 }
 0x1ba   :  { %v133_v62 = vpop.permute.xlu1 %132 }
 0x1bb   :  { %v141_v0 = vmul.f32 %v133_v62, %v50_v60  ;;  %794 = vmatprep.subr.msk.bf16.mxu0 %vm168_vm5, %v152_v61  ;;  %v170_v1 = vsel %vm168_vm5, %v152_v61, 0 }
 0x1bc   :  { %746 = vmatpush3.bf16.msra.mxu0 %v170_v1 }
 0x1bd   :  { %v151_v2 = vpack.c.bf16 %v141_v0, %v140_v63 }
 0x1bf   :  { %747 = vmatprep.subr.bf16.mxu0 %v151_v2 }
 0x1c0   :  { %748 = vmatpush3.bf16.msra.mxu0 %v151_v2 }
 0x1c3   :  { %750 = vmatmul.mubr.msk.bf16.vlgmr.msra.gmra.mxu0 %vm161_vm4, %v808_v3 }
 0x1c4   :  { %769 = vmatprep.mubr.msk.bf16.mxu0 %vm161_vm4, %v807_v54 }
 0x283   :  { %v751_v6 = vpop.f32.mrf.mxu0 }
 0x284   :  { %v222_v9 = vadd.f32 %v751_v6, %v142_v57 }
 0x285   :  { %v206_v7 = vpop.f32.mrf.mxu0 }
 0x286   :  { %v220_v11 = vadd.f32 %v206_v7, %v140_v63  ;;  %v224_v14 = vpack.c.bf16 %v222_v9, %v222_v9 }
 0x287   :  { %v752_v8 = vpop.f32.mrf.mxu0 }
 0x289   :  { %v209_v10 = vpop.f32.mrf.mxu0 }
 0x28a   :  { %v221_v12 = vadd.f32 %v209_v10, %v141_v0 }
 0x28c   :  { %v223_v13 = vpack.c.bf16 %v221_v12, %v220_v11 }
 0x28e   :  { %755 = vmatprep.mubr.msk.bf16.mxu1 %vm231_vm6, %v223_v13 }
 0x28f   :  { %756 = vmatmul.mubr.msk.bf16.vlgmr.msra.gmra.mxu1 %vm231_vm6, %v224_v14 }
 0x290   :  { %760 = vmatpush3.bf16.msra.mxu1 %v809_v15 }
 0x291   :  { %773 = vmatprep.subr.bf16.mxu1 %v810_v43 }
 0x34f   :  { %v757_v16 = vpop.f32.mrf.mxu1 }
 0x350   :  { %v284_v19 = vadd.f32 %v757_v16, %v703_v17 }
 0x351   :  { %v275_v18 = vpop.f32.mrf.mxu1 }
 0x352   :  { %v276_v21 = vadd.f32 %v703_v17, %v275_v18  ;;  %v291_v24 = vmax.f32 %v284_v19, 0.0 }
 0x353   :  { %v758_v20 = vpop.f32.mrf.mxu1 }
 0x354   :  { %v289_v25 = vmax.f32 %v276_v21, 0.0  ;;  %v293_v28 = vpack.c.bf16 %v291_v24, %v291_v24  ;;  %v587_v20 = vld [vmem:[%s1039_s2] sm:$0xf] }
 0x355   :  { %v278_v22 = vpop.f32.mrf.mxu1 }
 0x356   :  { %v279_v23 = vadd.f32 %v703_v17, %v278_v22 }
 0x358   :  { %v290_v26 = vmax.f32 %v279_v23, 0.0 }
 0x35a   :  { %v292_v27 = vpack.c.bf16 %v290_v26, %v289_v25 }
 0x35c   :  { %761 = vmatprep.mubr.msk.bf16.mxu1 %vm306_vm7, %v292_v27 }
 0x35d   :  { %762 = vmatmul.mubr.msk.bf16.vlgmr.msra.gmra.mxu1 %vm306_vm7, %v293_v28 }
 0x35e   :  { %774 = vmatpush3.bf16.msra.mxu1 %v810_v43 }
 0x35f   :  { %785 = vmatprep.subr.mxu1 %v863_v4 }
 0x41d   :  { %v763_v30 = vpop.f32.mrf.mxu1 }
 0x41e   :  { %v356_v31 = vadd.f32 %v763_v30, %v706_v29 }
 0x41f   :  { %v347_v32 = vpop.f32.mrf.mxu1 }
 0x420   :  { %v363_v33 = vmax.f32 %v356_v31, 0.0  ;;  %v348_v34 = vadd.f32 %v706_v29, %v347_v32 }
 0x421   :  { %v764_v35 = vpop.f32.mrf.mxu1 }
 0x422   :  { %v374_v36 = vpack.c.bf16 %v363_v33, %v363_v33  ;;  %366 = vst.msk [vmem:[#allocation2 + $0x10] sm:$0xff] %vm306_vm7, %v363_v33  ;;  %v361_v37 = vmax.f32 %v348_v34, 0.0 }
 0x423   :  { %v350_v38 = vpop.f32.mrf.mxu1 }
 0x424   :  { %364 = vst.msk [vmem:[#allocation2] sm:$0xff] %vm306_vm7, %v361_v37  ;;  %v351_v39 = vadd.f32 %v706_v29, %v350_v38  ;;  %796 = vmatprep.subr.msk.bf16.mxu0 %vm168_vm5, %v374_v36  ;;  %v376_v40 = vsel %vm168_vm5, %v374_v36, 0 }
 0x425   :  { %766 = vmatpush3.bf16.msra.mxu0 %v376_v40 }
 0x426   :  { %v362_v41 = vmax.f32 %v351_v39, 0.0 }
 0x428   :  { %365 = vst.msk [vmem:[#allocation2 + $0x8] sm:$0xff] %vm306_vm7, %v362_v41  ;;  %v373_v42 = vpack.c.bf16 %v362_v41, %v361_v37 }
 0x42a   :  { %767 = vmatprep.subr.bf16.mxu0 %v373_v42 }
 0x42b   :  { %768 = vmatpush3.bf16.msra.mxu0 %v373_v42 }
 0x42c   :  { %779 = vmatprep.subr.bf16.mxu0 %v811_v53 }
 0x42e   :  { %770 = vmatmul.mubr.msk.bf16.vlgmr.msra.gmra.mxu0 %vm161_vm4, %v808_v3  ;;  %v716_v3 = vld [vmem:[%s1049_s12] ss:$0 sm:$0xff] }
 0x42f   :  { %780 = vmatpush3.bf16.msra.mxu0 %v811_v53 }
 0x4ee   :  { %v771_v44 = vpop.f32.mrf.mxu0 }
 0x4ef   :  { %v428_v47 = vadd.f32 %v771_v44, %v363_v33 }
 0x4f0   :  { %v412_v45 = vpop.f32.mrf.mxu0 }
 0x4f1   :  { %v426_v49 = vadd.f32 %v412_v45, %v361_v37  ;;  %v430_v52 = vpack.c.bf16 %v428_v47, %v428_v47 }
 0x4f2   :  { %v772_v46 = vpop.f32.mrf.mxu0 }
 0x4f4   :  { %v415_v48 = vpop.f32.mrf.mxu0 }
 0x4f5   :  { %v427_v50 = vadd.f32 %v415_v48, %v362_v41 }
 0x4f7   :  { %v429_v51 = vpack.c.bf16 %v427_v50, %v426_v49 }
 0x4f9   :  { %775 = vmatprep.mubr.msk.bf16.mxu1 %vm306_vm7, %v429_v51 }
 0x4fa   :  { %776 = vmatmul.mubr.msk.bf16.vlgmr.msra.gmra.mxu1 %vm306_vm7, %v430_v52 }
 0x4fb   :  { %791 = vmatprep.mubr.msk.f32.mxu1 %vm865_vm8, %v863_v4 }
 0x5ba   :  { %v777_v54 = vpop.f32.mrf.mxu1 }
 0x5bb   :  { %v492_v57 = vadd.f32 %v777_v54, %v712_v55 }
 0x5bc   :  { %v483_v56 = vpop.f32.mrf.mxu1 }
 0x5bd   :  { %v484_v59 = vadd.f32 %v712_v55, %v483_v56  ;;  %v499_v62 = vmax.f32 %v492_v57, 0.0 }
 0x5be   :  { %v778_v58 = vpop.f32.mrf.mxu1 }
 0x5bf   :  { %v497_v63 = vmax.f32 %v484_v59, 0.0  ;;  %v501_v2 = vpack.c.bf16 %v499_v62, %v499_v62 }
 0x5c0   :  { %v486_v60 = vpop.f32.mrf.mxu1 }
 0x5c1   :  { %v487_v61 = vadd.f32 %v712_v55, %v486_v60 }
 0x5c3   :  { %v498_v0 = vmax.f32 %v487_v61, 0.0 }
 0x5c5   :  { %v500_v1 = vpack.c.bf16 %v498_v0, %v497_v63 }
 0x5c7   :  { %781 = vmatprep.mubr.msk.bf16.mxu0 %vm306_vm7, %v500_v1 }
 0x5c8   :  { %782 = vmatmul.mubr.msk.bf16.vlgmr.msra.gmra.mxu0 %vm306_vm7, %v501_v2 }
 0x688   :  { %v783_v5 = vpop.f32.mrf.mxu0 }
 0x689   :  { %v563_v6 = vadd.f32 %v783_v5, %v716_v3 }
 0x68a   :  { %v554_v7 = vpop.f32.mrf.mxu0 }
 0x68b   :  { %v570_v8 = vmax.f32 %v563_v6, 0.0  ;;  %v555_v9 = vadd.f32 %v716_v3, %v554_v7 }
 0x68c   :  { %v784_v10 = vpop.f32.mrf.mxu0 }
 0x68d   :  { %578 = vrot.lane.b32.xlu1 %v570_v8, %s864_s10  ;;  %v568_v12 = vmax.f32 %v555_v9, 0.0 }
 0x68e   :  { %v557_v11 = vpop.f32.mrf.mxu0 }
 0x68f   :  { %v558_v13 = vadd.f32 %v716_v3, %v557_v11 }
 0x691   :  { %v569_v14 = vmax.f32 %v558_v13, 0.0  ;;  %574 = vrot.lane.b32.xlu1 %v568_v12, %s864_s10 }
 0x693   :  { %576 = vrot.lane.b32.xlu0 %v569_v14, %s864_s10 }
 0x6ff   :  { %v579_v15 = vpop.permute.xlu1 %578 }
 0x700   :  { %586 = vst.msk [vmem:[#allocation2 + $0x10] sm:$0xff] %vm583_vm9, %v579_v15 }
 0x703   :  { %v575_v16 = vpop.permute.xlu1 %574 }
 0x704   :  { %584 = vst.msk [vmem:[#allocation2] sm:$0xff] %vm583_vm9, %v575_v16 }
 0x705   :  { %v577_v17 = vpop.permute.xlu0 %576 }
 0x706   :  { %585 = vst.msk [vmem:[#allocation2 + $0x8] sm:$0xff] %vm583_vm9, %v577_v17 }
 0x707   :  { %v590_v18 = vld [vmem:[#allocation2 + $0x10] sm:$0xff] }
 0x708   :  { %786 = vmatpush3.msra.mxu1 %v590_v18 }
 0x709   :  { %787 = vmatprep.subr.mxu1 %v863_v4 }
 0x70b   :  { %v588_v21 = vld [vmem:[#allocation2] sm:$0xff] }
 0x70d   :  { %v589_v19 = vld [vmem:[#allocation2 + $0x8] sm:$0xff] }
 0x70e   :  { %788 = vmatpush3.msra.mxu1 %v589_v19 }
 0x70f   :  { %789 = vmatprep.subr.mxu1 %v863_v4 }
 0x710   :  { %790 = vmatpush3.msra.mxu1 %v588_v21 }
 0x711   :  { %792 = vmatmul.mubr.msk.f32.vlgmr.msra.gmra.mxu1 %vm161_vm4, %v587_v20 }
 0x712   :  { %829 = shalt.err (!%p826_p4)
}
 0x713   :  { %s867_s27 = smov 128   ;;  %s868_s28 = smov 8   ;;  %vm664_vm10 = vcmask 257024  }
 0x714   :  { %677 = dma.vmem_to_hbm [thread:$0]  %s672_s25, 384, %s1050_s13, [#allocation3], %s867_s27, %s867_s27, %s868_s28  }
 0x715   :  { %s869_s2 = smov [#allocation4]  }
 0x716   :  { %s684_s15 = sshll.u32 %s869_s2, 4  ;;  %s685_s15 = int_to_ptr.vmem [resolvable:$true] %s684_s15 }
 0x717   :  { %s838_s16 = scalar_lea.vmem %s685_s15, 64  ;;  %p843_p6 = scmp.lt.s32.totalorder %s685_s15, %s685_s15 }
 0x718   :  { %p839_p5 = scmp.ne.s32.totalorder %s685_s15, %s838_s16  ;;  %p844_p7 = scmp.lt.s32.totalorder %s838_s16, %s838_s16 }
 0x71a   :  { %p845_p8 = por %p844_p7, %p843_p6 }
 0x71c   :  { %p846_p9 = pnand %p845_p8, %p839_p5 }
 0x7d1   :  { %v660_v22 = vpop.f32.mrf.mxu1 }
 0x7d2   :  { %665 = vst.msk [vmem:[#allocation4] sm:$0xf] %vm664_vm10, %v660_v22 }
 0x7d3   :  { %v793_v23 = vpop.f32.mrf.mxu1 }
 0x7d4   :  { %849 = shalt.err (!%p846_p9)
}
 0x7d5   :  { %687 = dma.vmem_to_hbm [thread:$0]  %s685_s15, 64, %s1051_s14, [#allocation5]  }
 0x7d6   :  { %858 = dma.done.wait [#allocation3], 384  }
 0x7d7   :  { %859 = vsyncadd [#allocation3], 4294966912 }
 0x7d8   :  { %860 = dma.done.wait [#allocation5], 64  }
 0x7d9   :  { %861 = vsyncadd [#allocation5], 4294967232 }
 0x7da   :  { %694 = vsyncpa [#allocation3], 1 }
 0x7db   :  { %695 = vsyncpa [#allocation5], 1 }

</bundles_post_ra>
